<compile_context>
chip_gen: v6e
topology: v6e:2x2x1
jax: 0.10.0
libtpu: 0.0.40
codegen_flags: <defaults>
</compile_context>

<pallas_src>
from functools import partial

import jax
import jax.numpy as jnp
from jax import lax
from jax.experimental import pallas as pl
from jax.experimental.pallas import tpu as pltpu


def _conv_kernel(x_ref, w_ref, o_ref, patch_ref, *, k, s, cin, ws, th, p_tile, n_h):
    """One (batch, output-row-tile) grid step.

    x_ref    : (1, s*s*cin, L)      space-to-depth image, flat spatial (resident per batch)
    w_ref    : (Cout, k*k*cin)      weight matrix (resident)
    o_ref    : (1, Cout, p_tile)    lane-dense output tile (flattened, width-major = ws)
    patch_ref: (k*k*cin, p_tile)    (K, P) im2col scratch
    """
    # Base flat position of this row tile (static when there is a single tile).
    if n_h == 1:
        base = 0
    else:
        base = pl.program_id(1) * (th * ws)

    # Pack the (K, P) patch: each tap is ONE contiguous (cin, p_tile) slice of
    # the flat spatial axis -> dense lane stores, no reshape, no relayout.
    for kh in range(k):
        qh, rh = kh // s, kh % s
        for kw in range(k):
            qw, rw = kw // s, kw % s
            j = kh * k + kw
            coff = (rh * s + rw) * cin            # stride phase -> channel offset
            off = base + qh * ws + qw             # tap offset in flat spatial index
            patch_ref[j * cin:(j + 1) * cin, :] = (
                x_ref[0, coff:coff + cin, pl.ds(off, p_tile)])

    # Single fat-K MXU matmul: (Cout, K) @ (K, P) -> (Cout, P), f32 accumulate.
    out = lax.dot_general(
        w_ref[...], patch_ref[...],
        dimension_numbers=(((1,), (0,)), ((), ())),
        preferred_element_type=jnp.float32,
    )
    o_ref[0] = out.astype(o_ref.dtype)


def _vmem_bytes(shape, dtype):
    """Bytes of a VMEM buffer with lane (128) / sublane (8*4B-words) padding."""
    itemsize = jnp.dtype(dtype).itemsize
    sub = 8 * max(1, 4 // itemsize)               # 8 for f32, 16 for bf16, 32 for int8
    dims = list(shape)
    if len(dims) >= 1:
        dims[-1] = -(-dims[-1] // 128) * 128
    if len(dims) >= 2:
        dims[-2] = -(-dims[-2] // sub) * sub
    n = 1
    for d in dims:
        n *= int(d)
    return n * itemsize


def conv2d_c_module(x_nchw, w_oihw, stride=1, compute_dtype=None, max_positions=2048):
    """Forward of module C: Conv2d(nIn, nOut, k, stride, pad=(k-1)//2, bias=False).

    x_nchw: (N, Cin, H, W)   w_oihw: (Cout, Cin, k, k)   returns NCHW output.
    """
    N, cin, H, W = x_nchw.shape
    cout, cin_w, k, k2 = w_oihw.shape
    assert cin_w == cin and k2 == k
    s = int(stride)
    pad = (k - 1) // 2
    h_out = (H + 2 * pad - k) // s + 1
    w_out = (W + 2 * pad - k) // s + 1
    out_dtype = x_nchw.dtype

    if compute_dtype is not None:                 # opt-in bf16 (v6e/v7x only)
        x_nchw = x_nchw.astype(compute_dtype)
        w_oihw = w_oihw.astype(compute_dtype)

    # ---- wrapper-side layout glue (pure XLA, small) --------------------------
    qmax = (k - 1) // s                           # tap extent in the downsampled grid
    hs = h_out + qmax
    ws_ = w_out + qmax

    # 'same' padding, then pad/crop to exactly (hs*s, ws_*s) pixels.
    tgt_h, tgt_w = hs * s, ws_ * s
    xp = jnp.pad(x_nchw, ((0, 0), (0, 0),
                          (pad, max(0, tgt_h - H - pad)),
                          (pad, max(0, tgt_w - W - pad))))
    xp = xp[:, :, :tgt_h, :tgt_w]

    # Space-to-depth: fold the stride phases into channels -> stride-1 conv.
    # Channel order c2 = (rh*s + rw)*cin + ci  (matches the kernel's coff).
    ssc = s * s * cin
    x = xp.reshape(N, cin, hs, s, ws_, s)
    x = jnp.transpose(x, (0, 3, 5, 1, 2, 4)).reshape(N, ssc, hs * ws_)

    # Row-tile of the output; P (flattened positions, width-major ws_) is padded
    # to a multiple of 128 -> lane-dense stores everywhere, no masked fallback.
    th = min(h_out, max(1, max_positions // ws_))
    n_h = -(-h_out // th)
    p_tile = -(-(th * ws_) // 128) * 128

    # Flat length so every tap slice (including the junk tail) stays in bounds.
    L = max(hs * ws_, (n_h - 1) * th * ws_ + qmax * ws_ + qmax + p_tile)
    x = jnp.pad(x, ((0, 0), (0, 0), (0, L - hs * ws_)))

    # Weights as (Cout, K) with K ordered (kh, kw, cin) to match the patch rows.
    kk = k * k * cin
    w = jnp.transpose(w_oihw, (0, 2, 3, 1)).reshape(cout, kk)

    kern = partial(_conv_kernel, k=k, s=s, cin=cin, ws=ws_, th=th,
                   p_tile=p_tile, n_h=n_h)

    # VMEM budget on lane/sublane-padded shapes (double-buffered in/out blocks).
    vmem_need = (2 * _vmem_bytes((1, ssc, L), x.dtype)
                 + 2 * _vmem_bytes((cout, kk), w.dtype)
                 + 2 * _vmem_bytes((1, cout, p_tile), out_dtype)
                 + _vmem_bytes((kk, p_tile), x.dtype)
                 + (4 << 20))                                   # headroom
    vmem_limit = int(min(max(vmem_need, 16 << 20), 112 << 20))  # v5e/v6e physical cap

    out = pl.pallas_call(
        kern,
        out_shape=jax.ShapeDtypeStruct((N, cout, n_h * p_tile), out_dtype),
        grid=(N, n_h),
        in_specs=[
            # whole flat image per batch, resident across the row-tile axis
            pl.BlockSpec((1, ssc, L), lambda b, t: (b, 0, 0)),
            pl.BlockSpec((cout, kk), lambda b, t: (0, 0)),
        ],
        out_specs=pl.BlockSpec((1, cout, p_tile), lambda b, t: (b, 0, t)),
        scratch_shapes=[pltpu.VMEM((kk, p_tile), x.dtype)],
        compiler_params=pltpu.CompilerParams(
            dimension_semantics=("parallel", "parallel"),
            vmem_limit_bytes=vmem_limit,
        ),
    )(x, w)

    # Crop the lane-padding tail and the padding columns/rows; result is NCHW.
    out = out.reshape(N, cout, n_h, p_tile)[..., :th * ws_]
    out = out.reshape(N, cout, n_h * th, ws_)[:, :, :h_out, :w_out]
    return out


if __name__ == "__main__":
    # Module config consistent with the PyTorch spec: C(nIn=4, nOut=8, kSize=3)
    nIn, nOut, kSize = 4, 8, 3
    N, H, W = 2, 16, 16

    key = jax.random.PRNGKey(0)
    kx, kw = jax.random.split(key)
    x = jax.random.normal(kx, (N, nIn, H, W), dtype=jnp.float32)
    fan_in = nIn * kSize * kSize
    w = jax.random.normal(kw, (nOut, nIn, kSize, kSize), dtype=jnp.float32) * (2.0 / fan_in) ** 0.5

    pad = (kSize - 1) // 2
    for stride in (1, 2):          # stride handled fully in-kernel for both
        out = jax.block_until_ready(conv2d_c_module(x, w, stride=stride))
        ref = lax.conv_general_dilated(
            x, w,
            window_strides=(stride, stride),
            padding=((pad, pad), (pad, pad)),
            dimension_numbers=("NCHW", "OIHW", "NCHW"),
        )
        assert out.shape == ref.shape, (stride, out.shape, ref.shape)
        assert jnp.allclose(out, ref, atol=1e-4, rtol=1e-4), f"mismatch at stride={stride}"

    print("KERNEL_OK")
</pallas_src>

<mosaic_0001>
module attributes {stable_mosaic.version = 11 : i64} {
  func.func @_conv_kernel(%arg0: i32, %arg1: i32, %arg2: memref<1x4x422xf32, #tpu.memory_space<vmem>>, %arg3: memref<8x36xf32, #tpu.memory_space<vmem>>, %arg4: memref<1x8x384xf32, #tpu.memory_space<vmem>>, %arg5: memref<36x384xf32, #tpu.memory_space<vmem>>) attributes {dimension_semantics = [#tpu.dimension_semantics<parallel>, #tpu.dimension_semantics<parallel>], iteration_bounds = array<i64: 2, 1>, scalar_prefetch = 0 : i64, scratch_operands = 1 : i64, tpu.core_type = #tpu.core_type<tc>, window_params = [{transform_indices = @transform_0, window_bounds = array<i64: 1, 4, 422>}, {pipeline_mode = #tpu.pipeline_mode<synchronous>, transform_indices = @transform_1, window_bounds = array<i64: 8, 36>}, {transform_indices = @transform_2, window_bounds = array<i64: 1, 8, 384>}]} {
    %c0 = arith.constant 0 : index
    %c0_0 = arith.constant 0 : index
    %c0_1 = arith.constant 0 : index
    %0 = vector.load %arg2[%c0, %c0_0, %c0_1] : memref<1x4x422xf32, #tpu.memory_space<vmem>>, vector<1x4x384xf32>
    %1 = vector.shape_cast %0 : vector<1x4x384xf32> to vector<4x384xf32>
    %c0_2 = arith.constant 0 : index
    %c0_3 = arith.constant 0 : index
    %2 = vector.load %arg5[%c0_2, %c0_3] : memref<36x384xf32, #tpu.memory_space<vmem>>, vector<4x384xf32>
    tpu.vector_store %arg5[%c0_2, %c0_3], %1 {strides = array<i32>} : memref<36x384xf32, #tpu.memory_space<vmem>>, vector<4x384xf32>,
    %c0_4 = arith.constant 0 : index
    %c0_5 = arith.constant 0 : index
    %c1 = arith.constant 1 : index
    %3 = vector.load %arg2[%c0_4, %c0_5, %c1] : memref<1x4x422xf32, #tpu.memory_space<vmem>>, vector<1x4x384xf32>
    %4 = vector.shape_cast %3 : vector<1x4x384xf32> to vector<4x384xf32>
    %c4 = arith.constant 4 : index
    %c0_6 = arith.constant 0 : index
    %5 = vector.load %arg5[%c4, %c0_6] : memref<36x384xf32, #tpu.memory_space<vmem>>, vector<4x384xf32>
    tpu.vector_store %arg5[%c4, %c0_6], %4 {strides = array<i32>} : memref<36x384xf32, #tpu.memory_space<vmem>>, vector<4x384xf32>,
    %c0_7 = arith.constant 0 : index
    %c0_8 = arith.constant 0 : index
    %c2 = arith.constant 2 : index
    %6 = vector.load %arg2[%c0_7, %c0_8, %c2] : memref<1x4x422xf32, #tpu.memory_space<vmem>>, vector<1x4x384xf32>
    %7 = vector.shape_cast %6 : vector<1x4x384xf32> to vector<4x384xf32>
    %c8 = arith.constant 8 : index
    %c0_9 = arith.constant 0 : index
    %8 = vector.load %arg5[%c8, %c0_9] : memref<36x384xf32, #tpu.memory_space<vmem>>, vector<4x384xf32>
    tpu.vector_store %arg5[%c8, %c0_9], %7 {strides = array<i32>} : memref<36x384xf32, #tpu.memory_space<vmem>>, vector<4x384xf32>,
    %c0_10 = arith.constant 0 : index
    %c0_11 = arith.constant 0 : index
    %c18 = arith.constant 18 : index
    %9 = vector.load %arg2[%c0_10, %c0_11, %c18] : memref<1x4x422xf32, #tpu.memory_space<vmem>>, vector<1x4x384xf32>
    %10 = vector.shape_cast %9 : vector<1x4x384xf32> to vector<4x384xf32>
    %c12 = arith.constant 12 : index
    %c0_12 = arith.constant 0 : index
    %11 = vector.load %arg5[%c12, %c0_12] : memref<36x384xf32, #tpu.memory_space<vmem>>, vector<4x384xf32>
    tpu.vector_store %arg5[%c12, %c0_12], %10 {strides = array<i32>} : memref<36x384xf32, #tpu.memory_space<vmem>>, vector<4x384xf32>,
    %c0_13 = arith.constant 0 : index
    %c0_14 = arith.constant 0 : index
    %c19 = arith.constant 19 : index
    %12 = vector.load %arg2[%c0_13, %c0_14, %c19] : memref<1x4x422xf32, #tpu.memory_space<vmem>>, vector<1x4x384xf32>
    %13 = vector.shape_cast %12 : vector<1x4x384xf32> to vector<4x384xf32>
    %c16 = arith.constant 16 : index
    %c0_15 = arith.constant 0 : index
    %14 = vector.load %arg5[%c16, %c0_15] : memref<36x384xf32, #tpu.memory_space<vmem>>, vector<4x384xf32>
    tpu.vector_store %arg5[%c16, %c0_15], %13 {strides = array<i32>} : memref<36x384xf32, #tpu.memory_space<vmem>>, vector<4x384xf32>,
    %c0_16 = arith.constant 0 : index
    %c0_17 = arith.constant 0 : index
    %c20 = arith.constant 20 : index
    %15 = vector.load %arg2[%c0_16, %c0_17, %c20] : memref<1x4x422xf32, #tpu.memory_space<vmem>>, vector<1x4x384xf32>
    %16 = vector.shape_cast %15 : vector<1x4x384xf32> to vector<4x384xf32>
    %c20_18 = arith.constant 20 : index
    %c0_19 = arith.constant 0 : index
    %17 = vector.load %arg5[%c20_18, %c0_19] : memref<36x384xf32, #tpu.memory_space<vmem>>, vector<4x384xf32>
    tpu.vector_store %arg5[%c20_18, %c0_19], %16 {strides = array<i32>} : memref<36x384xf32, #tpu.memory_space<vmem>>, vector<4x384xf32>,
    %c0_20 = arith.constant 0 : index
    %c0_21 = arith.constant 0 : index
    %c36 = arith.constant 36 : index
    %18 = vector.load %arg2[%c0_20, %c0_21, %c36] : memref<1x4x422xf32, #tpu.memory_space<vmem>>, vector<1x4x384xf32>
    %19 = vector.shape_cast %18 : vector<1x4x384xf32> to vector<4x384xf32>
    %c24 = arith.constant 24 : index
    %c0_22 = arith.constant 0 : index
    %20 = vector.load %arg5[%c24, %c0_22] : memref<36x384xf32, #tpu.memory_space<vmem>>, vector<4x384xf32>
    tpu.vector_store %arg5[%c24, %c0_22], %19 {strides = array<i32>} : memref<36x384xf32, #tpu.memory_space<vmem>>, vector<4x384xf32>,
    %c0_23 = arith.constant 0 : index
    %c0_24 = arith.constant 0 : index
    %c37 = arith.constant 37 : index
    %21 = vector.load %arg2[%c0_23, %c0_24, %c37] : memref<1x4x422xf32, #tpu.memory_space<vmem>>, vector<1x4x384xf32>
    %22 = vector.shape_cast %21 : vector<1x4x384xf32> to vector<4x384xf32>
    %c28 = arith.constant 28 : index
    %c0_25 = arith.constant 0 : index
    %23 = vector.load %arg5[%c28, %c0_25] : memref<36x384xf32, #tpu.memory_space<vmem>>, vector<4x384xf32>
    tpu.vector_store %arg5[%c28, %c0_25], %22 {strides = array<i32>} : memref<36x384xf32, #tpu.memory_space<vmem>>, vector<4x384xf32>,
    %c0_26 = arith.constant 0 : index
    %c0_27 = arith.constant 0 : index
    %c38 = arith.constant 38 : index
    %24 = vector.load %arg2[%c0_26, %c0_27, %c38] : memref<1x4x422xf32, #tpu.memory_space<vmem>>, vector<1x4x384xf32>
    %25 = vector.shape_cast %24 : vector<1x4x384xf32> to vector<4x384xf32>
    %c32 = arith.constant 32 : index
    %c0_28 = arith.constant 0 : index
    %26 = vector.load %arg5[%c32, %c0_28] : memref<36x384xf32, #tpu.memory_space<vmem>>, vector<4x384xf32>
    tpu.vector_store %arg5[%c32, %c0_28], %25 {strides = array<i32>} : memref<36x384xf32, #tpu.memory_space<vmem>>, vector<4x384xf32>,
    %c0_29 = arith.constant 0 : index
    %c0_30 = arith.constant 0 : index
    %27 = vector.load %arg3[%c0_29, %c0_30] : memref<8x36xf32, #tpu.memory_space<vmem>>, vector<8x36xf32>
    %c0_31 = arith.constant 0 : index
    %c0_32 = arith.constant 0 : index
    %28 = vector.load %arg5[%c0_31, %c0_32] : memref<36x384xf32, #tpu.memory_space<vmem>>, vector<36x384xf32>
    %cst = arith.constant dense<0.000000e+00> : vector<8x384xf32>
    %29 = tpu.matmul %27, %28, %cst {dimension_numbers = #tpu.dot_dimension_numbers<[1], [0], [0], [1], [0, 0, 1, 1], [], []>} : vector<8x36xf32>, vector<36x384xf32>, vector<8x384xf32> -> vector<8x384xf32>
    %c0_33 = arith.constant 0 : index
    %c0_34 = arith.constant 0 : index
    %c0_35 = arith.constant 0 : index
    %30 = vector.load %arg4[%c0_33, %c0_34, %c0_35] : memref<1x8x384xf32, #tpu.memory_space<vmem>>, vector<1x8x384xf32>
    %31 = vector.shape_cast %30 : vector<1x8x384xf32> to vector<8x384xf32>
    %32 = vector.shape_cast %29 : vector<8x384xf32> to vector<1x8x384xf32>
    tpu.vector_store %arg4[%c0_33, %c0_34, %c0_35], %32 {strides = array<i32>} : memref<1x8x384xf32, #tpu.memory_space<vmem>>, vector<1x8x384xf32>,
    return
  }
  func.func @transform_0(%arg0: i32, %arg1: i32) -> (i32, i32, i32) {
    %c0_i32 = arith.constant 0 : i32
    %c0_i32_0 = arith.constant 0 : i32
    %c0_i32_1 = arith.constant 0 : i32
    return %arg0, %c0_i32, %c0_i32_0 : i32, i32, i32
  }
  func.func @transform_1(%arg0: i32, %arg1: i32) -> (i32, i32) {
    %c0_i32 = arith.constant 0 : i32
    %c0_i32_0 = arith.constant 0 : i32
    %c0_i32_1 = arith.constant 0 : i32
    return %c0_i32, %c0_i32_0 : i32, i32
  }
  func.func @transform_2(%arg0: i32, %arg1: i32) -> (i32, i32, i32) {
    %c0_i32 = arith.constant 0 : i32
    %c0_i32_0 = arith.constant 0 : i32
    return %arg0, %c0_i32, %arg1 : i32, i32, i32
  }
}

</mosaic_0001>

<bundles_post_ra>
// kernel: tpu_custom_call.1
= control target key start
LH: loop header
LB: loop body
LE: loop exit
PB: predicated region body
PF: predicated region fallthrough
CT: control target
= control target key end

     0   :  { %7 = vsyncpa [#allocation4], 0  ;;  %s1179_s0 = inlined_call_operand.hbm [shape: f32[2,4,422], index: 0, kind: input, shape index: {}]   ;;  %s1180_s1 = inlined_call_operand.hbm [shape: f32[8,36], index: 1, kind: input, shape index: {}]   ;;  %s1181_s2 = inlined_call_operand.hbm [shape: f32[2,8,384], index: 2, kind: output, shape index: {}]  }
   0x1   :  { %9 = vsyncpa [#allocation4 + $0x1], 0 }
   0x2   :  { %10 = vsyncpa [#allocation7], 0 }
   0x3   :  { %11 = vsyncpa [#allocation5], 0 }
   0x4   :  { %13 = vsyncpa [#allocation5 + $0x1], 0  ;;  %s966_s9 = smov 0   ;;  %s968_s10 = smov 0  }
   0x5   :  { %s970_s11 = smov 0   ;;  %s972_s12 = smov 0  }
   0x6   :  { %s974_s13 = smov 0   ;;  %s976_s14 = smov 0  }
   0x7 LB: > { %s670_s15 = sadd.s32 4294967295, %s936_s14   ;;  %s671_s16 = sadd.s32 4294967294, %s936_s14   ;;  %s936_s14 = sphi %s976_s14, %s19_s14   ;;  %s932_s13 = sphi %s974_s13, %s1198_s13   ;;  %s928_s12 = sphi %s972_s12, %s1197_s12   ;;  %s924_s11 = sphi %s970_s11, %s1196_s11   ;;  %s920_s10 = sphi %s968_s10, %s1195_s10   ;;  %s916_s9 = sphi %s966_s9, %s1194_s9  }
   0x8   : > { %p51_p0 = scmp.ne.s32.totalorder %s920_s10, %s916_s9  ;;  %p1000_p1 = scmp.eq.s32.totalorder %s670_s15, 0 }
   0x9   : > { %p1004_p2 = scmp.eq.s32.totalorder %s670_s15, 1  ;;  %p104_p3 = scmp.eq.s32.totalorder %s671_s16, 1 }
   0xa   : > { %p1010_p4 = por %p1000_p1, %p51_p0  ;;  %p672_p5 = scmp.ge.s32.totalorder %s936_s14, 1 }
   0xb   : > { %p1015_p6 = por %p104_p3, %p51_p0  ;;  %p111_p7 = scmp.lt.s32.totalorder %s936_s14, 3 }
   0xc   : > { %s1185_s19 = scalar_select %p1010_p4, 1, 0 }
   0xd   : > { %s1186_s20 = scalar_select %p1015_p6, 1, 0 }
   0xe   : > { %p1020_p8 = pnand %p672_p5, %p111_p7  ;;  %s938_s22 = smov [#allocation6]  }
   0xf   : > { %s124_s23 = sshll.u32 %s938_s22, 4  ;;  %s31_s25 = sadd.s32 1, %s932_s13  ;;  %s125_s23 = int_to_ptr.vmem [resolvable:$true] %s124_s23 }
  0x10   : > { %p719_p10 = pneg %p1020_p8  ;;  %s38_s26 = sadd.s32 1, %s924_s11 }
  0x11   : > { %p33_p12 = scmp.ge.s32.totalorder %s31_s25, 2  ;;  %s809_s27 = scalar_lea.vmem %s125_s23, 128 }
  0x12   : > { %p1029_p11 = pnand %p719_p10, %p1000_p1  ;;  %p810_p0 = scmp.ne.s32.totalorder %s125_s23, %s809_s27 }
  0x13   : > { %p817_p7 = scmp.lt.s32.totalorder %s125_s23, %s125_s23  ;;  %p818_p6 = scmp.lt.s32.totalorder %s809_s27, %s809_s27 }
  0x14   : > { %p800_p13 = pneg %p1029_p11 }
  0x15   : > { %p819_p9 = por %p818_p6, %p817_p7 }
  0x16   : > { %p812_p3 = pnand %p810_p0, %p800_p13 }
  0x18   : > { %p813_p5 = pneg %p812_p3 }
  0x1a   : > { %p820_p4 = pnand %p819_p9, %p813_p5 }
  0x1c   : > { %823 = shalt.err (!%p820_p4)
}
  0x1d   : > { %722 = dma.hbm_to_vmem [thread:$0]  (!%p1029_p11), %s1180_s1, 128, %s125_s23, [#allocation7]  }
  0x1e   : > { %s1200_s25 = smov (%p33_p12, %s31_s25), 0  ;;  %p45_p6 = scmp.ne.s32.totalorder %s924_s11, %s920_s10 }
  0x1f   : > { %p46_p4 = scmp.eq.s32.totalorder %s936_s14, 0  ;;  %s35_s30 = ssub.s32 %s932_s13, %s1200_s25 }
  0x20   : > { %p732_p9 = scmp.lt.s32.totalorder %s936_s14, 2  ;;  %p36_p10 = scmp.eq.s32.totalorder %s35_s30, 0 }
  0x21   : > { %p47_p13 = por %p46_p4, %p45_p6  ;;  %p1052_p0 = por %p1004_p2, %p45_p6 }
  0x22   : > { %s135_s4 = sand.u32 1, %s924_s11   ;;  %s689_s7 = sshll.u32 %s932_s13, 8 }
  0x23   : > { %s1058_s5 = scalar_select %p36_p10, %s924_s11, %s38_s26  }
  0x24   : > { %s675_s6 = sshll.u32 %s135_s4, 4  ;;  %s145_s16 = scalar_lea.hbm %s1179_s0, %s689_s7 }
  0x25   : > { %s139_s22 = scalar_lea.vmem [#allocation3], %s675_s6  ;;  %p1064_p11 = pnand %p732_p9, %p47_p13 }
  0x26   : > { %s147_s23 = sshll.u32 %s139_s22, 4  ;;  %s136_s18 = scalar_lea.sflag [#allocation4], %s135_s4  ;;  %s148_s23 = int_to_ptr.vmem [resolvable:$true] %s147_s23 }
  0x27   : > { %p826_p2 = pneg %p1064_p11  ;;  %s837_s27 = scalar_lea.vmem %s148_s23, 256 }
  0x28   : > { %p838_p12 = scmp.ne.s32.totalorder %s148_s23, %s837_s27  ;;  %s939_s26 = smov [#allocation3]  }
  0x29   : > { %s842_s28 = sshll.u32 %s939_s26, 4  ;;  %s843_s28 = int_to_ptr.vmem [resolvable:$false] %s842_s28 }
  0x2a   : > { %p840_p3 = pnand %p838_p12, %p826_p2  ;;  %s844_s29 = scalar_lea.vmem %s843_s28, 512 }
  0x2b   : > { %p845_p7 = scmp.lt.s32.totalorder %s148_s23, %s843_s28  ;;  %p846_p6 = scmp.lt.s32.totalorder %s844_s29, %s837_s27 }
  0x2c   : > { %p841_p5 = pneg %p840_p3 }
  0x2d   : > { %p847_p4 = por %p846_p6, %p845_p7 }
  0x2f   : > { %p848_p10 = pnand %p847_p4, %p841_p5 }
  0x31   : > { %851 = shalt.err (!%p848_p10)
}
  0x32   : > { %726 = dma.hbm_to_vmem [thread:$0]  (!%p1064_p11), %s145_s16, 256, %s148_s23, %s136_s18  }
  0x33   : > { %156 = sbr.rel (%p1020_p8) target bundleno = 454 (0x1c6), region = 28  ;;  %s1075_s30 = sand.u32 (!%p1020_p8), 1, %s920_s10  }
  0x34   : > { %s679_s4 = sshll.u32 (!%p1020_p8), %s1075_s30, 4  ;;  %s159_s6 = scalar_lea.sflag (!%p1020_p8), [#allocation4], %s1075_s30 }
  0x35   : > { %s1079_s7 = scalar_lea.vmem (!%p1020_p8), [#allocation3], %s679_s4  ;;  %p1191_p9 = scmp.ne.s32.totalorder (!%p1020_p8), %s1185_s19, 0 }
  0x38   : > { %903 = dma.done.wait (%p1191_p9), %s159_s6, 256  }
  0x39   : > { %905 = vsyncadd (%p1191_p9), %s159_s6, 4294967040 }
  0x3a   : > { %907 = dma.done.wait (%p1000_p1), [#allocation7], 128  }
  0x3b   : > { %909 = vsyncadd (%p1000_p1), [#allocation7], 4294967168  ;;  %v365_v0 = vld [vmem:[%s1079_s7 + $0x8] sm:$0xff]  ;;  %v364_v1 = vld [vmem:[%s1079_s7] sm:$0xff]  ;;  %s940_s21 = smov 90   ;;  %s941_s8 = smov 91  }
  0x3c   : > { %374 = vrot.lane.b32.xlu0 %v365_v0, %s940_s21  ;;  %370 = vrot.lane.b32.xlu1 %v364_v1, %s940_s21  ;;  %v368_v2 = vcombine.high %v364_v1, %v364_v1  ;;  %193 = vst [vmem:[#allocation2 + $0x30] sm:$0xf] %v364_v1  ;;  %s942_s19 = smov 92   ;;  %v345_v3 = vcombine.low %v365_v0, %v365_v0  ;;  %v943_v4 = vmov 0.0   ;;  %s944_s17 = smov 109   ;;  %vm949_vm0 = vmmov 0  }
  0x3d   : > { %696 = vmatprep.subr.mxu1 %v943_v4  ;;  %482 = vmatprep.mubr.f32.mxu0 %v943_v4  ;;  %v369_v5 = vcombine.high %v365_v0, %v365_v0  ;;  %v344_v6 = vcombine.low %v364_v1, %v364_v1  ;;  %s945_s15 = smov 108   ;;  %s946_s16 = smov 126   ;;  %v189_v7 = vld [vmem:[%s1079_s7 + $0x8] sm:$0xf]  ;;  %vm378_vm1 = vcmask 736256   ;;  %vm330_vm2 = vcmask 752640  }
  0x3e   : > { %194 = vst [vmem:[#allocation2] sm:$0xf] %v368_v2  ;;  %s947_s22 = smov 110   ;;  %195 = vst [vmem:[#allocation2 + $0x58] sm:$0xf] %v189_v7  ;;  %s948_s23 = smov 127   ;;  %706 = vmatprep.mubr.msk.f32.mxu1 %vm949_vm0, %v943_v4 }
  0x3f   : > { %vm354_vm3 = vcmask 744448   ;;  %vm408_vm4 = vcmask 1043456   ;;  %vm282_vm5 = vcmask 891904   ;;  %vm306_vm6 = vcmask 883712   ;;  %s709_s24 = smul.u32 24, %s1075_s30  ;;  %s563_s6 = scalar_lea.sflag [#allocation5], %s1075_s30 }
  0x40   : > { %348 = vrot.lane.b32.xlu1 %v364_v1, %s941_s8  ;;  %326 = vrot.lane.b32.xlu0 %v365_v0, %s942_s19  ;;  %vm234_vm7 = vcmask 1031168   ;;  %vm258_vm8 = vcmask 900096   ;;  %vm210_vm9 = vcmask 1039360   ;;  %vm404_vm10 = vcmask 293888   ;;  %s710_s26 = smul.u32 384, %s928_s12  ;;  %s950_s12 = smov [#allocation8]  }
  0x41   : > { %s186_s18 = scalar_lea.vmem [#allocation8], %s709_s24 }
  0x42   : > { %s579_s27 = sshll.u32 %s186_s18, 4  ;;  %s1133_s4 = scalar_lea.hbm %s1181_s2, %s710_s26  ;;  %s1128_s27 = int_to_ptr.vmem [resolvable:$true] %s579_s27 }
  0x43   : > { %s852_s7 = scalar_lea.vmem %s1128_s27, 384 }
  0x44   : > { %372 = vrot.lane.b32.xlu0 %v368_v2, %s940_s21  ;;  %324 = vrot.lane.b32.xlu1 %v368_v2, %s942_s19  ;;  %p853_p1 = scmp.ne.s32.totalorder %s1128_s27, %s852_s7 }
  0x46   : > { %p854_p8 = pnand %p853_p1, %p1052_p0 }
  0x48   : > { %350 = vrot.lane.b32.xlu0 %v345_v3, %s941_s8  ;;  %322 = vrot.lane.b32.xlu1 %v364_v1, %s942_s19  ;;  %p855_p13 = pneg %p854_p8 }
  0x4c   : > { %346 = vrot.lane.b32.xlu0 %v344_v6, %s941_s8  ;;  %376 = vrot.lane.b32.xlu1 %v369_v5, %s940_s21  ;;  %s856_s21 = sshll.u32 %s950_s12, 4  ;;  %s857_s21 = int_to_ptr.vmem [resolvable:$false] %s856_s21 }
  0x4d   : > { %p859_p11 = scmp.lt.s32.totalorder %s1128_s27, %s857_s21 }
  0x50   : > { %278 = vrot.lane.b32.xlu1 %v365_v0, %s944_s17  ;;  %276 = vrot.lane.b32.xlu0 %v368_v2, %s944_s17 }
  0x54   : > { %302 = vrot.lane.b32.xlu1 %v345_v3, %s945_s15  ;;  %300 = vrot.lane.b32.xlu0 %v364_v1, %s945_s15 }
  0x58   : > { %298 = vrot.lane.b32.xlu1 %v344_v6, %s945_s15  ;;  %274 = vrot.lane.b32.xlu0 %v364_v1, %s944_s17 }
  0x5c   : > { %352 = vrot.lane.b32.xlu1 %v365_v0, %s941_s8  ;;  %328 = vrot.lane.b32.xlu0 %v369_v5, %s942_s19  ;;  %s858_s8 = scalar_lea.vmem %s857_s21, 768 }
  0x5d   : > { %p860_p2 = scmp.lt.s32.totalorder %s858_s8, %s852_s7 }
  0x5f   : > { %p861_p12 = por %p860_p2, %p859_p11 }
  0x60   : > { %230 = vrot.lane.b32.xlu1 %v365_v0, %s946_s16  ;;  %228 = vrot.lane.b32.xlu0 %v368_v2, %s946_s16 }
  0x61   : > { %p862_p3 = pnand %p861_p12, %p855_p13 }
  0x64   : > { %254 = vrot.lane.b32.xlu1 %v345_v3, %s947_s22  ;;  %252 = vrot.lane.b32.xlu0 %v364_v1, %s947_s22 }
  0x68   : > { %250 = vrot.lane.b32.xlu1 %v344_v6, %s947_s22  ;;  %226 = vrot.lane.b32.xlu0 %v364_v1, %s946_s16 }
  0x6c   : > { %304 = vrot.lane.b32.xlu1 %v365_v0, %s945_s15  ;;  %280 = vrot.lane.b32.xlu0 %v369_v5, %s944_s17 }
  0x70   : > { %206 = vrot.lane.b32.xlu1 %v345_v3, %s948_s23  ;;  %204 = vrot.lane.b32.xlu0 %v364_v1, %s948_s23 }
  0x74   : > { %232 = vrot.lane.b32.xlu1 %v369_v5, %s946_s16  ;;  %202 = vrot.lane.b32.xlu0 %v344_v6, %s948_s23 }
  0x78   : > { %208 = vrot.lane.b32.xlu1 %v365_v0, %s948_s23  ;;  %256 = vrot.lane.b32.xlu0 %v365_v0, %s947_s22 }
  0xae   : > { %v375_v8 = vpop.permute.xlu0 %374  ;;  %v371_v9 = vpop.permute.xlu1 %370 }
  0xb2   : > { %v349_v10 = vpop.permute.xlu1 %348  ;;  %v327_v11 = vpop.permute.xlu0 %326 }
  0xb6   : > { %v373_v12 = vpop.permute.xlu0 %372  ;;  %v325_v13 = vpop.permute.xlu1 %324 }
  0xb7   : > { %v379_v14 = vsel %vm378_vm1, %v371_v9, %v373_v12  ;;  %v380_v15 = vsel %vm378_vm1, %v373_v12, %v375_v8  ;;  %v332_v16 = vsel %vm330_vm2, %v325_v13, %v327_v11 }
  0xb8   : > { %385 = vst [vmem:[#allocation2 + $0x60] sm:$0xf] %v379_v14  ;;  %386 = vst [vmem:[#allocation2 + $0x70] sm:$0xf] %v380_v15 }
  0xb9   : > { %338 = vst [vmem:[#allocation2 + $0x10] sm:$0xf] %v332_v16 }
  0xba   : > { %v351_v17 = vpop.permute.xlu0 %350  ;;  %v323_v18 = vpop.permute.xlu1 %322 }
  0xbb   : > { %v356_v19 = vsel %vm354_vm3, %v349_v10, %v351_v17  ;;  %v331_v20 = vsel %vm330_vm2, %v323_v18, %v325_v13  ;;  %v388_v13 = vld [vmem:[#allocation6] sm:$0xff] }
  0xbc   : > { %362 = vst [vmem:[#allocation2 + $0x10] sm:$0xf0] %v356_v19  ;;  %337 = vst [vmem:[#allocation2 + $0x20] sm:$0xf] %v331_v20 }
  0xbe   : > { %v347_v21 = vpop.permute.xlu0 %346  ;;  %v377_v22 = vpop.permute.xlu1 %376 }
  0xbf   : > { %v355_v23 = vsel %vm354_vm3, %v347_v21, %v349_v10  ;;  %v381_v24 = vsel %vm378_vm1, %v375_v8, %v377_v22  ;;  %v402_v25 = vld [vmem:[#allocation2 + $0x70] sm:$0xf]  ;;  %v401_v26 = vld [vmem:[#allocation2 + $0x60] sm:$0xf] }
  0xc0   : > { %361 = vst [vmem:[#allocation2 + $0x20] sm:$0xf0] %v355_v23  ;;  %387 = vst [vmem:[#allocation2 + $0x28] sm:$0xf] %v381_v24  ;;  %681 = vmatprep.subr.msk.mxu0 %vm408_vm4, %v402_v25 }
  0xc1   : > { %682 = vmatpush1.msk.msra.mxu0 %vm408_vm4, %v401_v26 }
  0xc2   : > { %v279_v27 = vpop.permute.xlu1 %278  ;;  %v277_v28 = vpop.permute.xlu0 %276 }
  0xc3   : > { %v284_v29 = vsel %vm282_vm5, %v277_v28, %v279_v27  ;;  %v399_v30 = vld [vmem:[#allocation2 + $0x10] sm:$0xff] }
  0xc4   : > { %290 = vst [vmem:[#allocation2 + $0x48] sm:$0xf] %v284_v29  ;;  %442 = vmatprep.subr.mxu0 %v399_v30 }
  0xc6   : > { %v303_v31 = vpop.permute.xlu1 %302  ;;  %v301_v32 = vpop.permute.xlu0 %300 }
  0xc7   : > { %v308_v33 = vsel %vm306_vm6, %v301_v32, %v303_v31  ;;  %v398_v34 = vld [vmem:[#allocation2 + $0x20] sm:$0xff]  ;;  %v403_v35 = vld [vmem:[#allocation2 + $0x28] sm:$0xf] }
  0xc8   : > { %314 = vst [vmem:[#allocation2 + $0x48] sm:$0xf0] %v308_v33  ;;  %443 = vmatpush1.msra.mxu0 %v398_v34  ;;  %697 = vmatpush3.msk.msra.mxu1 %vm408_vm4, %v403_v35 }
  0xc9   : > { %698 = vmatprep.subr.mxu1 %v943_v4 }
  0xca   : > { %v299_v36 = vpop.permute.xlu1 %298  ;;  %v275_v37 = vpop.permute.xlu0 %274 }
  0xcb   : > { %v307_v38 = vsel %vm306_vm6, %v299_v36, %v301_v32  ;;  %v283_v39 = vsel %vm282_vm5, %v275_v37, %v277_v28 }
  0xcc   : > { %313 = vst [vmem:[#allocation2 + $0x8] sm:$0xf0] %v307_v38  ;;  %289 = vst [vmem:[#allocation2 + $0x8] sm:$0xf] %v283_v39 }
  0xce   : > { %v353_v40 = vpop.permute.xlu1 %352  ;;  %v329_v41 = vpop.permute.xlu0 %328 }
  0xcf   : > { %v357_v42 = vsel %vm354_vm3, %v351_v17, %v353_v40  ;;  %v333_v43 = vsel %vm330_vm2, %v327_v11, %v329_v41  ;;  %v396_v44 = vld [vmem:[#allocation2 + $0x48] sm:$0xff] }
  0xd0   : > { %363 = vst [vmem:[#allocation2 + $0x38] sm:$0xf0] %v357_v42  ;;  %339 = vst [vmem:[#allocation2 + $0x38] sm:$0xf] %v333_v43  ;;  %444 = vmatprep.subr.mxu0 %v396_v44 }
  0xd2   : > { %v231_v45 = vpop.permute.xlu1 %230  ;;  %v229_v46 = vpop.permute.xlu0 %228 }
  0xd3   : > { %v236_v47 = vsel %vm234_vm7, %v229_v46, %v231_v45  ;;  %v395_v48 = vld [vmem:[#allocation2 + $0x8] sm:$0xff] }
  0xd4   : > { %242 = vst [vmem:[#allocation2 + $0x50] sm:$0xf] %v236_v47  ;;  %445 = vmatpush1.msra.mxu0 %v395_v48 }
  0xd6   : > { %v255_v49 = vpop.permute.xlu1 %254  ;;  %v253_v50 = vpop.permute.xlu0 %252 }
  0xd7   : > { %v260_v51 = vsel %vm258_vm8, %v253_v50, %v255_v49  ;;  %v400_v52 = vld [vmem:[#allocation2 + $0x38] sm:$0xff] }
  0xd8   : > { %266 = vst [vmem:[#allocation2 + $0x50] sm:$0xf0] %v260_v51  ;;  %699 = vmatpush3.msra.mxu1 %v400_v52 }
  0xd9   : > { %700 = vmatprep.subr.mxu1 %v943_v4 }
  0xda   : > { %v251_v53 = vpop.permute.xlu1 %250  ;;  %v227_v54 = vpop.permute.xlu0 %226 }
  0xdb   : > { %v259_v55 = vsel %vm258_vm8, %v251_v53, %v253_v50  ;;  %v235_v56 = vsel %vm234_vm7, %v227_v54, %v229_v46 }
  0xdc   : > { %265 = vst [vmem:[#allocation2 + $0x18] sm:$0xf0] %v259_v55  ;;  %241 = vst [vmem:[#allocation2 + $0x18] sm:$0xf] %v235_v56 }
  0xde   : > { %v305_v57 = vpop.permute.xlu1 %304  ;;  %v281_v58 = vpop.permute.xlu0 %280 }
  0xdf   : > { %v309_v59 = vsel %vm306_vm6, %v303_v31, %v305_v57  ;;  %v285_v60 = vsel %vm282_vm5, %v279_v27, %v281_v58  ;;  %v393_v61 = vld [vmem:[#allocation2 + $0x50] sm:$0xff] }
  0xe0   : > { %315 = vst [vmem:[#allocation2 + $0x40] sm:$0xf0] %v309_v59  ;;  %291 = vst [vmem:[#allocation2 + $0x40] sm:$0xf] %v285_v60  ;;  %446 = vmatprep.subr.mxu0 %v393_v61 }
  0xe2   : > { %v207_v62 = vpop.permute.xlu1 %206  ;;  %v205_v63 = vpop.permute.xlu0 %204 }
  0xe3   : > { %v212_v0 = vsel %vm210_vm9, %v205_v63, %v207_v62  ;;  %v392_v1 = vld [vmem:[#allocation2 + $0x18] sm:$0xff] }
  0xe4   : > { %218 = vst [vmem:[#allocation2] sm:$0xf0] %v212_v0  ;;  %447 = vmatpush1.msra.mxu0 %v392_v1 }
  0xe6   : > { %v233_v2 = vpop.permute.xlu1 %232  ;;  %v203_v3 = vpop.permute.xlu0 %202 }
  0xe7   : > { %v237_v5 = vsel %vm234_vm7, %v231_v45, %v233_v2  ;;  %v211_v6 = vsel %vm210_vm9, %v203_v3, %v205_v63  ;;  %v397_v7 = vld [vmem:[#allocation2 + $0x40] sm:$0xff] }
  0xe8   : > { %243 = vst [vmem:[#allocation2 + $0x68] sm:$0xf] %v237_v5  ;;  %217 = vst [vmem:[#allocation2 + $0x30] sm:$0xf0] %v211_v6  ;;  %701 = vmatpush3.msra.mxu1 %v397_v7 }
  0xe9   : > { %702 = vmatprep.subr.mxu1 %v943_v4 }
  0xea   : > { %v209_v8 = vpop.permute.xlu1 %208  ;;  %v257_v9 = vpop.permute.xlu0 %256 }
  0xeb   : > { %v213_v10 = vsel %vm210_vm9, %v207_v62, %v209_v8  ;;  %v261_v11 = vsel %vm258_vm8, %v255_v49, %v257_v9  ;;  %v390_v12 = vld [vmem:[#allocation2] sm:$0xff] }
  0xec   : > { %219 = vst [vmem:[#allocation2 + $0x58] sm:$0xf0] %v213_v10  ;;  %267 = vst [vmem:[#allocation2 + $0x68] sm:$0xf0] %v261_v11  ;;  %448 = vmatprep.subr.mxu0 %v390_v12 }
  0xef   : > { %v389_v14 = vld [vmem:[#allocation2 + $0x30] sm:$0xff] }
  0xf0   : > { %449 = vmatpush1.msra.mxu0 %v389_v14 }
  0xf1   : > { %683 = vmatmul.mubr.msk.f32.vlgmr.msra.gmra.mxu0 %vm404_vm10, %v388_v13 }
  0xf3   : > { %v394_v15 = vld [vmem:[#allocation2 + $0x68] sm:$0xff]  ;;  %v391_v16 = vld [vmem:[#allocation2 + $0x58] sm:$0xff] }
  0xf4   : > { %703 = vmatpush3.msra.mxu1 %v394_v15 }
  0xf5   : > { %704 = vmatprep.subr.mxu1 %v943_v4 }
  0xf6   : > { %705 = vmatpush3.msra.mxu1 %v391_v16 }
  0xf7   : > { %707 = vmatmul.mubr.msk.f32.vlgmr.msra.gmra.mxu1 %vm404_vm10, %v388_v13 }
 0x1b1   : > { %v484_v17 = vpop.f32.mrf.mxu0 }
 0x1b2   : > { %559 = vst [vmem:[%s186_s18] sm:$0xff] %v484_v17 }
 0x1b3   : > { %v486_v18 = vpop.f32.mrf.mxu0 }
 0x1b4   : > { %560 = vst [vmem:[%s186_s18 + $0x8] sm:$0xff] %v486_v18 }
 0x1b7   : > { %v555_v4 = vpop.f32.mrf.mxu1 }
 0x1b8   : > { %561 = vst [vmem:[%s186_s18 + $0x10] sm:$0xff] %v555_v4 }
 0x1b9   : > { %v708_v19 = vpop.f32.mrf.mxu1 }
 0x1ba   : > { %865 = shalt.err (!%p862_p3)
}
 0x1bb   : > { %s866_s19 = scalar_lea.hbm %s1133_s4, 384  ;;  %s870_s15 = scalar_lea.hbm %s1181_s2, 768 }
 0x1bc   : > { %p867_p5 = scmp.ne.s32.totalorder %s1133_s4, %s866_s19  ;;  %p871_p4 = scmp.lt.s32.totalorder %s1133_s4, %s1181_s2 }
 0x1bd   : > { %p872_p10 = scmp.lt.s32.totalorder %s870_s15, %s866_s19 }
 0x1be   : > { %p868_p7 = pnand %p867_p5, %p1052_p0 }
 0x1bf   : > { %p873_p9 = por %p872_p10, %p871_p4 }
 0x1c0   : > { %p869_p6 = pneg %p868_p7 }
 0x1c2   : > { %p874_p1 = pnand %p873_p9, %p869_p6 }
 0x1c4   : > { %877 = shalt.err (!%p874_p1)
}
 0x1c5   : > { %717 = dma.vmem_to_hbm [thread:$0]  (%p1052_p0), %s1128_s27, 384, %s1133_s4, %s563_s6  }
 0x1c6 PF: > { %s591_s23 = sand.u32 1, %s916_s9   ;;  %p1192_p8 = scmp.ne.s32.totalorder %s1186_s20, 0 }
 0x1c7   : > { %p1193_p13 = scmp.ge.s32.totalorder %s936_s14, 2  ;;  %s592_s24 = scalar_lea.sflag [#allocation5], %s591_s23 }
 0x1c9   : > { %p728_p11 = pnand %p1193_p13, %p1192_p8 }
 0x1cb   : > { %p729_p2 = pneg %p728_p11 }
 0x1cd   : > { %911 = dma.done.wait (%p729_p2), %s592_s24, 384  }
 0x1ce   : > { %913 = vsyncadd (%p729_p2), %s592_s24, 4294966912  ;;  %s19_s14 = sadd.s32 1, %s936_s14   ;;  %s1194_s9 = smov %s920_s10 }
 0x1cf   : > { %p16_p12 = scmp.ge.s32.totalorder %s19_s14, 4   ;;  %s1195_s10 = smov %s924_s11 }
 0x1d0   : > { %s1196_s11 = smov %s1058_s5  ;;  %s1197_s12 = smov %s932_s13 }
 0x1d1   : > { %s1198_s13 = smov %s1200_s25  ;;  %18 = sbr.rel (!%p16_p12) target bundleno = 7 (0x7), region = 77 }
 0x1d6   :  { %597 = vsyncpa [#allocation4], 1 }
 0x1d7   :  { %599 = vsyncpa [#allocation4 + $0x1], 1 }
 0x1d8   :  { %600 = vsyncpa [#allocation7], 1 }
 0x1d9   :  { %601 = vsyncpa [#allocation5], 1 }
 0x1da   :  { %603 = vsyncpa [#allocation5 + $0x1], 1 }

</bundles_post_ra>
